<compile_context>
chip_gen: v6e
topology: v6e:2x2x1
jax: 0.10.0
libtpu: 0.0.40
codegen_flags: <defaults>
</compile_context>

<pallas_src>
import jax
import jax.numpy as jnp
from jax.experimental import pallas as pl
from jax.experimental.pallas import tpu as pltpu

_EPS = 1e-5
_LANE = 128
_SUB = 8
_VMEM_LIMIT = 48 * 1024 * 1024     # explicit: v5e's scoped default is only 16 MiB
_VMEM_BUDGET = 28 * 1024 * 1024    # target double-buffered footprint (headroom on v7x)


def _round_up(n, m):
    return ((n + m - 1) // m) * m


def _pick_tile(n, unit, cap):
    """Tile size for an axis of logical length `n` (trace-time, static shapes).

    Returns (tile, padded_total).  Preference order:
      (a) the whole unit-rounded axis when it fits under `cap` (no grid steps wasted),
      (b) a divisor of the rounded axis near `cap` (zero padding waste),
      (c) a modest fixed tile so padding waste stays bounded.
    """
    n_r = _round_up(n, unit)
    if n_r <= cap:
        return n_r, n_r
    cand = (cap // unit) * unit
    while cand >= unit:
        if n_r % cand == 0 and cand * 8 >= cap:   # divisor, and not uselessly small
            return cand, n_r
        cand -= unit
    tile = min(cap, max(unit, _round_up(512, unit)))
    return tile, _round_up(n, tile)


# ---------------------------------------------------------------------------
# Pass 1: z = x @ W (bf16 operands, f32 accumulation), a = LeakyReLU(z),
#         written back compact (only the real pathway columns, f32).
# ---------------------------------------------------------------------------
def _pass1_kernel(x_ref, w_ref, a_ref, acc_ref):
    k = pl.program_id(1)

    @pl.when(k == 0)
    def _():
        acc_ref[...] = jnp.zeros_like(acc_ref)

    acc_ref[...] += jnp.dot(x_ref[...], w_ref[...],
                            preferred_element_type=jnp.float32)

    @pl.when(k == pl.num_programs(1) - 1)
    def _():
        z = acc_ref[...]                          # (TB, Pw) f32
        a = jnp.where(z >= 0.0, z, 0.2 * z)       # LeakyReLU(0.2), f32
        a_ref[...] = a[:, : a_ref.shape[1]]       # compact store: real pathways only


# ---------------------------------------------------------------------------
# Pass 2: folded BatchNorm + fc affine, then sigmoid:  out = sigmoid(a . c + c0)
# (mean/var/rsqrt were folded into c, c0 once in the wrapper — no per-tile EUP work)
# ---------------------------------------------------------------------------
def _pass2_kernel(a_ref, c_ref, c0_ref, o_ref):
    y = a_ref[...] * c_ref[...]                                   # (TB, P8) * (1, P8)
    logits = jnp.sum(y, axis=-1, keepdims=True) + c0_ref[0]       # (TB, 1)
    o_ref[...] = jax.nn.sigmoid(logits)


@jax.jit
def hiscom_forward(x, w_dense, gamma, beta, fc_w, fc_b):
    """x: (B, D) f32; w_dense: (D, P) f32 (scatter-packed pathway weights);
    gamma/beta/fc_w: (P,) f32; fc_b: () f32.  Returns (B, 1) f32."""
    B, D = x.shape
    P = w_dense.shape[1]

    Pp8 = _round_up(P, _SUB)      # compact pathway width (sublane granularity)
    Pw = _round_up(P, _LANE)      # MXU-friendly pathway width for the matmul only

    # ---- tile selection (bounded padding waste, W resident when it fits) ----
    TB, Bp = _pick_tile(B, _SUB, 1024)
    fixed_bytes = 4 * TB * Pw + 8 * TB * Pp8        # f32 acc scratch + 2x compact-a block
    per_tk_bytes = 4 * TB + 4 * Pw                  # 2x bf16 x block + 2x bf16 W block
    tk_cap = max(_LANE, ((_VMEM_BUDGET - fixed_bytes) // per_tk_bytes) // _LANE * _LANE)
    TK, Dp = _pick_tile(D, _LANE, tk_cap)
    nb, nk = Bp // TB, Dp // TK

    # ---- operand prep: cast to bf16 FIRST, pad only if needed (no padded f32
    #      copy of x is ever materialized in HBM) -------------------------------
    xb = x.astype(jnp.bfloat16)
    if (Bp, Dp) != (B, D):
        xb = jnp.pad(xb, ((0, Bp - B), (0, Dp - D)))
    wb = w_dense.astype(jnp.bfloat16)
    if (Dp, Pw) != (D, P):
        wb = jnp.pad(wb, ((0, Dp - D), (0, Pw - P)))

    # ---- Pass 1: matmul + LeakyReLU -> compact f32 activation ----------------
    a = pl.pallas_call(
        _pass1_kernel,
        out_shape=jax.ShapeDtypeStruct((Bp, Pp8), jnp.float32),
        grid_spec=pltpu.PrefetchScalarGridSpec(
            num_scalar_prefetch=0,
            grid=(nb, nk),                                       # reduction axis last
            in_specs=[
                pl.BlockSpec((TB, TK), lambda b, k: (b, k)),     # x tile (bf16)
                pl.BlockSpec((TK, Pw), lambda b, k: (k, 0)),     # W (fetched once when nk==1)
            ],
            out_specs=pl.BlockSpec((TB, Pp8), lambda b, k: (b, 0)),
            scratch_shapes=[pltpu.VMEM((TB, Pw), jnp.float32)],
        ),
        compiler_params=pltpu.CompilerParams(
            # b writes only per-tile output blocks -> "parallel" (v7x megacore);
            # k is the matmul reduction over the resident accumulator -> "arbitrary".
            dimension_semantics=("parallel", "arbitrary"),
            vmem_limit_bytes=_VMEM_LIMIT,
        ),
    )(xb, wb)

    # ---- BN batch stats + BN->fc fold (tiny XLA ops on the compact activation) ----
    gp = jnp.pad(gamma.reshape(-1).astype(jnp.float32), (0, Pp8 - P))
    bp = jnp.pad(beta.reshape(-1).astype(jnp.float32), (0, Pp8 - P))
    fwp = jnp.pad(fc_w.reshape(-1).astype(jnp.float32), (0, Pp8 - P))

    a_valid = a[:B] if Bp != B else a                      # exclude zero-padded rows
    mean = jnp.mean(a_valid, axis=0)                       # (Pp8,)
    var = jnp.mean(jnp.square(a_valid - mean), axis=0)     # biased, centered (stable)
    g = gp * jax.lax.rsqrt(var + _EPS)
    c = (g * fwp).reshape(1, Pp8)                          # folded scale  (padded cols -> 0)
    c0 = (jnp.asarray(fc_b, jnp.float32).reshape(()) +
          jnp.sum((bp - mean * g) * fwp)).reshape(1)       # folded shift + fc bias

    # ---- Pass 2: affine + sigmoid over the compact activation ----------------
    out = pl.pallas_call(
        _pass2_kernel,
        out_shape=jax.ShapeDtypeStruct((Bp, 1), jnp.float32),
        grid_spec=pltpu.PrefetchScalarGridSpec(
            num_scalar_prefetch=0,
            grid=(nb,),
            in_specs=[
                pl.BlockSpec((TB, Pp8), lambda i: (i, 0)),
                pl.BlockSpec((1, Pp8), lambda i: (0, 0)),
                pl.BlockSpec(memory_space=pltpu.MemorySpace.SMEM),   # c0 scalar
            ],
            out_specs=pl.BlockSpec((TB, 1), lambda i: (i, 0)),
        ),
        compiler_params=pltpu.CompilerParams(
            dimension_semantics=("parallel",),
            vmem_limit_bytes=_VMEM_LIMIT,
        ),
    )(a, c, c0)

    return out[:B] if Bp != B else out


def pack_pathway_weights(pathway_ws, idx, D):
    """Scatter each pathway's Linear(n_j, 1, bias=False) weight vector into a
    dense (D, P) matrix so all pathway linears become a single MXU matmul."""
    P = len(pathway_ws)
    W = jnp.zeros((D, P), dtype=jnp.float32)
    for j, (w_j, ix) in enumerate(zip(pathway_ws, idx)):
        W = W.at[jnp.asarray(ix, dtype=jnp.int32), j].set(jnp.asarray(w_j, jnp.float32))
    return W


if __name__ == "__main__":
    key = jax.random.PRNGKey(0)

    # Small, deterministic problem: 4 pathways of 6 variables each.
    nvar = [6, 6, 6, 6]
    idx = [list(range(0, 6)), list(range(6, 12)),
           list(range(12, 18)), list(range(18, 24))]
    B = 8
    D = sum(nvar)          # 24 features
    P = len(nvar)          # 4 pathways

    keys = jax.random.split(key, 3 + P)
    x = jax.random.normal(keys[0], (B, D), dtype=jnp.float32)
    pathway_ws = [jax.random.normal(keys[3 + j], (nvar[j],), jnp.float32) * 0.3
                  for j in range(P)]
    W = pack_pathway_weights(pathway_ws, idx, D)           # (D, P)

    gamma = jnp.ones((P,), jnp.float32)                    # BatchNorm1d defaults
    beta = jnp.zeros((P,), jnp.float32)
    fc_w = jax.random.normal(keys[1], (P,), jnp.float32) * 0.3
    fc_b = jax.random.normal(keys[2], (), jnp.float32) * 0.1

    out = jax.block_until_ready(hiscom_forward(x, W, gamma, beta, fc_w, fc_b))
    assert out.shape == (B, 1)

    # Reference 1: same bf16 matmul as the kernel, everything else f32.
    z = jnp.dot(x.astype(jnp.bfloat16), W.astype(jnp.bfloat16),
                preferred_element_type=jnp.float32)
    a = jnp.where(z >= 0, z, 0.2 * z)
    m = a.mean(0, keepdims=True)
    v = ((a - m) ** 2).mean(0, keepdims=True)
    y = (a - m) * jax.lax.rsqrt(v + 1e-5) * gamma + beta
    ref_bf16 = jax.nn.sigmoid(y @ fc_w.reshape(P, 1) + fc_b)
    assert jnp.allclose(out, ref_bf16, atol=1e-4, rtol=1e-4), \
        float(jnp.max(jnp.abs(out - ref_bf16)))

    # Reference 2: pure f32 (PyTorch-exact math); bf16 streaming loosens tolerance.
    z32 = x @ W
    a32 = jnp.where(z32 >= 0, z32, 0.2 * z32)
    m32 = a32.mean(0, keepdims=True)
    v32 = ((a32 - m32) ** 2).mean(0, keepdims=True)
    y32 = (a32 - m32) / jnp.sqrt(v32 + 1e-5) * gamma + beta
    ref_f32 = jax.nn.sigmoid(y32 @ fc_w.reshape(P, 1) + fc_b)
    assert jnp.allclose(out, ref_f32, atol=5e-3, rtol=5e-3), \
        float(jnp.max(jnp.abs(out - ref_f32)))

    print("KERNEL_OK")
</pallas_src>

<mosaic_0001>
module attributes {stable_mosaic.version = 11 : i64} {
  func.func @_pass2_kernel(%arg0: i32, %arg1: memref<8x8xf32, #tpu.memory_space<vmem>>, %arg2: memref<1x8xf32, #tpu.memory_space<vmem>>, %arg3: memref<1xf32, #tpu.memory_space<smem>>, %arg4: memref<8x1xf32, #tpu.memory_space<vmem>>) attributes {dimension_semantics = [#tpu.dimension_semantics<parallel>], iteration_bounds = array<i64: 1>, scalar_prefetch = 0 : i64, scratch_operands = 0 : i64, tpu.core_type = #tpu.core_type<tc>, window_params = [{transform_indices = @transform_0, window_bounds = array<i64: 8, 8>}, {pipeline_mode = #tpu.pipeline_mode<synchronous>, transform_indices = @transform_1, window_bounds = array<i64: 1, 8>}, {transform_indices = @transform_2, window_bounds = array<i64: 1>}, {transform_indices = @transform_3, window_bounds = array<i64: 8, 1>}]} {
    %c0 = arith.constant 0 : index
    %c0_0 = arith.constant 0 : index
    %0 = vector.load %arg1[%c0, %c0_0] : memref<8x8xf32, #tpu.memory_space<vmem>>, vector<8x8xf32>
    %c0_1 = arith.constant 0 : index
    %c0_2 = arith.constant 0 : index
    %1 = vector.load %arg2[%c0_1, %c0_2] : memref<1x8xf32, #tpu.memory_space<vmem>>, vector<1x8xf32>
    %2 = vector.broadcast %1 : vector<1x8xf32> to vector<8x8xf32>
    %3 = arith.mulf %0, %2 : vector<8x8xf32>
    %cst = arith.constant dense<0.000000e+00> : vector<8xf32>
    %4 = vector.multi_reduction <add>, %3, %cst [1] : vector<8x8xf32> to vector<8xf32>
    %5 = vector.shape_cast %4 : vector<8xf32> to vector<8x1xf32>
    %c0_3 = arith.constant 0 : index
    %6 = memref.load %arg3[%c0_3] : memref<1xf32, #tpu.memory_space<smem>>
    %7 = vector.broadcast %6 : f32 to vector<8x1xf32>
    %8 = arith.addf %5, %7 : vector<8x1xf32>
    %9 = arith.negf %8 : vector<8x1xf32>
    %10 = math.exp %9 : vector<8x1xf32>
    %cst_4 = arith.constant 1.000000e+00 : f32
    %11 = vector.broadcast %cst_4 : f32 to vector<8x1xf32>
    %12 = arith.addf %11, %10 : vector<8x1xf32>
    %13 = arith.divf %11, %12 : vector<8x1xf32>
    %c0_5 = arith.constant 0 : index
    %c0_6 = arith.constant 0 : index
    %14 = vector.load %arg4[%c0_5, %c0_6] : memref<8x1xf32, #tpu.memory_space<vmem>>, vector<8x1xf32>
    tpu.vector_store %arg4[%c0_5, %c0_6], %13 {strides = array<i32>} : memref<8x1xf32, #tpu.memory_space<vmem>>, vector<8x1xf32>,
    return
  }
  func.func @transform_0(%arg0: i32) -> (i32, i32) {
    %c0_i32 = arith.constant 0 : i32
    %c0_i32_0 = arith.constant 0 : i32
    return %arg0, %c0_i32 : i32, i32
  }
  func.func @transform_1(%arg0: i32) -> (i32, i32) {
    %c0_i32 = arith.constant 0 : i32
    %c0_i32_0 = arith.constant 0 : i32
    %c0_i32_1 = arith.constant 0 : i32
    return %c0_i32, %c0_i32_0 : i32, i32
  }
  func.func @transform_2(%arg0: i32) -> i32 {
    %c0_i32 = arith.constant 0 : i32
    %c0_i32_0 = arith.constant 0 : i32
    return %c0_i32 : i32
  }
  func.func @transform_3(%arg0: i32) -> (i32, i32) {
    %c0_i32 = arith.constant 0 : i32
    %c0_i32_0 = arith.constant 0 : i32
    return %arg0, %c0_i32 : i32, i32
  }
}

module attributes {stable_mosaic.version = 11 : i64} {
  func.func @_pass1_kernel(%arg0: i32, %arg1: i32, %arg2: memref<8x128xbf16, #tpu.memory_space<vmem>>, %arg3: memref<128x128xbf16, #tpu.memory_space<vmem>>, %arg4: memref<8x8xf32, #tpu.memory_space<vmem>>, %arg5: memref<8x128xf32, #tpu.memory_space<vmem>>) attributes {dimension_semantics = [#tpu.dimension_semantics<parallel>, #tpu.dimension_semantics<arbitrary>], iteration_bounds = array<i64: 1, 1>, scalar_prefetch = 0 : i64, scratch_operands = 1 : i64, tpu.core_type = #tpu.core_type<tc>, window_params = [{transform_indices = @transform_0, window_bounds = array<i64: 8, 128>}, {transform_indices = @transform_1, window_bounds = array<i64: 128, 128>}, {transform_indices = @transform_2, window_bounds = array<i64: 8, 8>}]} {
    %c0_i32 = arith.constant 0 : i32
    %0 = arith.cmpi eq, %arg1, %c0_i32 : i32
    %1 = arith.extui %0 : i1 to i32
    %c0_i32_0 = arith.constant 0 : i32
    %2 = arith.cmpi ne, %1, %c0_i32_0 : i32
    scf.if %2 {
      %cst_10 = arith.constant 0.000000e+00 : f32
      %12 = vector.broadcast %cst_10 : f32 to vector<8x128xf32>
      %c0_11 = arith.constant 0 : index
      %c0_12 = arith.constant 0 : index
      %13 = vector.load %arg5[%c0_11, %c0_12] : memref<8x128xf32, #tpu.memory_space<vmem>>, vector<8x128xf32>
      tpu.vector_store %arg5[%c0_11, %c0_12], %12 {strides = array<i32>} : memref<8x128xf32, #tpu.memory_space<vmem>>, vector<8x128xf32>,
    } else {
    }
    %c0 = arith.constant 0 : index
    %c0_1 = arith.constant 0 : index
    %3 = vector.load %arg5[%c0, %c0_1] : memref<8x128xf32, #tpu.memory_space<vmem>>, vector<8x128xf32>
    %c0_2 = arith.constant 0 : index
    %c0_3 = arith.constant 0 : index
    %4 = vector.load %arg2[%c0_2, %c0_3] : memref<8x128xbf16, #tpu.memory_space<vmem>>, vector<8x128xbf16>
    %c0_4 = arith.constant 0 : index
    %c0_5 = arith.constant 0 : index
    %5 = vector.load %arg3[%c0_4, %c0_5] : memref<128x128xbf16, #tpu.memory_space<vmem>>, vector<128x128xbf16>
    %cst = arith.constant dense<0.000000e+00> : vector<8x128xf32>
    %6 = tpu.matmul %4, %5, %cst {dimension_numbers = #tpu.dot_dimension_numbers<[1], [0], [0], [1], [0, 0, 1, 1], [], []>} : vector<8x128xbf16>, vector<128x128xbf16>, vector<8x128xf32> -> vector<8x128xf32>
    %7 = arith.addf %3, %6 : vector<8x128xf32>
    %c0_6 = arith.constant 0 : index
    %c0_7 = arith.constant 0 : index
    %8 = vector.load %arg5[%c0_6, %c0_7] : memref<8x128xf32, #tpu.memory_space<vmem>>, vector<8x128xf32>
    tpu.vector_store %arg5[%c0_6, %c0_7], %7 {strides = array<i32>} : memref<8x128xf32, #tpu.memory_space<vmem>>, vector<8x128xf32>,
    %c0_i32_8 = arith.constant 0 : i32
    %9 = arith.cmpi eq, %arg1, %c0_i32_8 : i32
    %10 = arith.extui %9 : i1 to i32
    %c0_i32_9 = arith.constant 0 : i32
    %11 = arith.cmpi ne, %10, %c0_i32_9 : i32
    scf.if %11 {
      %c0_10 = arith.constant 0 : index
      %c0_11 = arith.constant 0 : index
      %12 = vector.load %arg5[%c0_10, %c0_11] : memref<8x128xf32, #tpu.memory_space<vmem>>, vector<8x128xf32>
      %cst_12 = arith.constant 0.000000e+00 : f32
      %13 = vector.broadcast %cst_12 : f32 to vector<8x128xf32>
      %14 = arith.cmpf oge, %12, %13 : vector<8x128xf32>
      %cst_13 = arith.constant 2.000000e-01 : f32
      %15 = vector.broadcast %cst_13 : f32 to vector<8x128xf32>
      %16 = arith.mulf %15, %12 : vector<8x128xf32>
      %17 = arith.select %14, %12, %16 : vector<8x128xi1>, vector<8x128xf32>
      %18 = vector.extract_strided_slice %17 {offsets = [0, 0], sizes = [8, 8], strides = [1, 1]} : vector<8x128xf32> to vector<8x8xf32>
      %c0_14 = arith.constant 0 : index
      %c0_15 = arith.constant 0 : index
      %19 = vector.load %arg4[%c0_14, %c0_15] : memref<8x8xf32, #tpu.memory_space<vmem>>, vector<8x8xf32>
      tpu.vector_store %arg4[%c0_14, %c0_15], %18 {strides = array<i32>} : memref<8x8xf32, #tpu.memory_space<vmem>>, vector<8x8xf32>,
    } else {
    }
    return
  }
  func.func @transform_0(%arg0: i32, %arg1: i32) -> (i32, i32) {
    %c0_i32 = arith.constant 0 : i32
    return %arg0, %arg1 : i32, i32
  }
  func.func @transform_1(%arg0: i32, %arg1: i32) -> (i32, i32) {
    %c0_i32 = arith.constant 0 : i32
    %c0_i32_0 = arith.constant 0 : i32
    return %arg1, %c0_i32 : i32, i32
  }
  func.func @transform_2(%arg0: i32, %arg1: i32) -> (i32, i32) {
    %c0_i32 = arith.constant 0 : i32
    %c0_i32_0 = arith.constant 0 : i32
    return %arg0, %c0_i32 : i32, i32
  }
}

</mosaic_0001>

<bundles_post_ra>
// kernel: hiscom_forward.3
= control target key start
LH: loop header
LB: loop body
LE: loop exit
PB: predicated region body
PF: predicated region fallthrough
CT: control target
= control target key end

     0   :  { %vm24_vm0 = vcmask 64512   ;;  %vm37_vm1 = vcmask 7168   ;;  %s81_s0 = inlined_call_operand.vmem [shape: f32[8,8], index: 0, kind: input, shape index: {}]   ;;  %s82_s1 = inlined_call_operand.vmem [shape: f32[1,8], index: 1, kind: input, shape index: {}]   ;;  %s83_s2 = inlined_call_operand.<no memory space> [shape: f32[1], index: 2, kind: input, shape index: {}]   ;;  %s84_s3 = inlined_call_operand.vmem [shape: f32[8,1], index: 3, kind: output, shape index: {}]  }
   0x1   :  { %v15_v0 = vld [vmem:[%s81_s0] sm:$0xff]  ;;  %v29_v4 = vstv %s83_s2 }
   0x2   :  { %v43_v1 = vld [vmem:[%s82_s1] ss:$0 sm:$0xff] }
   0x3   :  { %v23_v2 = vmul.f32 %v43_v1, %v15_v0 }
   0x5   :  { %v25_v3 = vsel %vm24_vm0, %v23_v2, 0.0 }
   0x6   :  { %26 = vadd.xlane.f32.xlu0 %v25_v3 }
  0x8f   :  { %v27_v5 = vpop.xlane.xlu0 %26 }
  0x90   :  { %v30_v6 = vadd.f32 %v29_v4, %v27_v5 }
  0x92   :  { %v44_v7 = vmul.f32 -1.442695, %v30_v6 }
  0x94   :  { %45 = vpow2.f32 %v44_v7 }
  0xa1   :  { %v46_v8 = vpop.eup %45 }
  0xa2   :  { %v34_v9 = vadd.f32 1.0, %v46_v8 }
  0xa4   :  { %47 = vrcp.f32 %v34_v9 }
  0xb1   :  { %v48_v10 = vpop.eup %47 }
  0xb2   :  { %38 = vst.msk [vmem:[%s84_s3] sm:$0xff] %vm37_vm1, %v48_v10 }

// kernel: hiscom_forward.2
= control target key start
LH: loop header
LB: loop body
LE: loop exit
PB: predicated region body
PF: predicated region fallthrough
CT: control target
= control target key end

     0   :  { %v185_v0 = vmov 0.0   ;;  %vm186_vm0 = vmmov 0   ;;  %vm132_vm2 = vcmask 64512   ;;  %s232_s1 = inlined_call_operand.vmem [shape: bf16[128,128], index: 1, kind: input, shape index: {}]   ;;  %s233_s0 = inlined_call_operand.vmem [shape: bf16[8,128], index: 0, kind: input, shape index: {}]   ;;  %s234_s2 = inlined_call_operand.vmem [shape: f32[8,8], index: 2, kind: output, shape index: {}]  }
   0x1   :  { %155 = vmatprep.subr.bf16.mxu0 %v185_v0  ;;  %v177_v1 = vld [vmem:[%s232_s1 + $0x38] sm:$0xff]   ;;  %171 = vmatprep.mubr.msk.bf16.mxu0 %vm186_vm0, %v185_v0  ;;  %v178_v2 = vld [vmem:[%s232_s1 + $0x30] sm:$0xff]   ;;  %v179_v3 = vld [vmem:[%s232_s1 + $0x28] sm:$0xff]  }
   0x2   :  { %156 = vmatpush3.bf16.msra.mxu0 %v177_v1  ;;  %v180_v4 = vld [vmem:[%s232_s1 + $0x20] sm:$0xff]   ;;  %v181_v5 = vld [vmem:[%s232_s1 + $0x18] sm:$0xff]   ;;  %v182_v6 = vld [vmem:[%s232_s1 + $0x10] sm:$0xff]  }
   0x3   :  { %157 = vmatprep.subr.bf16.mxu0 %v185_v0  ;;  %v183_v7 = vld [vmem:[%s232_s1 + $0x8] sm:$0xff]   ;;  %v184_v8 = vld [vmem:[%s232_s1] sm:$0xff]  }
   0x4   :  { %v18_v9 = vld [vmem:[%s233_s0] sm:$0xf] }
   0x6   :  { %158 = vmatpush3.bf16.msra.mxu0 %v178_v2 }
   0x7   :  { %159 = vmatprep.subr.bf16.mxu0 %v185_v0 }
   0xa   :  { %160 = vmatpush3.bf16.msra.mxu0 %v179_v3 }
   0xb   :  { %161 = vmatprep.subr.bf16.mxu0 %v185_v0 }
   0xe   :  { %162 = vmatpush3.bf16.msra.mxu0 %v180_v4 }
   0xf   :  { %163 = vmatprep.subr.bf16.mxu0 %v185_v0 }
  0x12   :  { %164 = vmatpush3.bf16.msra.mxu0 %v181_v5 }
  0x13   :  { %165 = vmatprep.subr.bf16.mxu0 %v185_v0 }
  0x16   :  { %166 = vmatpush3.bf16.msra.mxu0 %v182_v6 }
  0x17   :  { %167 = vmatprep.subr.bf16.mxu0 %v185_v0 }
  0x1a   :  { %168 = vmatpush3.bf16.msra.mxu0 %v183_v7 }
  0x1b   :  { %169 = vmatprep.subr.bf16.mxu0 %v185_v0 }
  0x1e   :  { %170 = vmatpush3.bf16.msra.mxu0 %v184_v8 }
  0x21   :  { %172 = vmatmul.mubr.bf16.vlgmr.msra.gmra.mxu0 %v18_v9 }
  0xe1   :  { %v117_v10 = vpop.f32.mrf.mxu0 }
  0xe2   :  { %vm129_vm1 = vcmp.ge.f32.partialorder %v117_v10, 0.0  ;;  %v130_v11 = vmul.f32 0.2, %v117_v10 }
  0xe3   :  { %v173_v12 = vpop.f32.mrf.mxu0 }
  0xe4   :  { %v131_v13 = vsel %vm129_vm1, %v117_v10, %v130_v11 }
  0xe5   :  { %133 = vst.msk [vmem:[%s234_s2] sm:$0xff] %vm132_vm2, %v131_v13  ;;  %v120_v14 = vpop.f32.mrf.mxu0 }
  0xe7   :  { %v174_v15 = vpop.f32.mrf.mxu0 }

</bundles_post_ra>
